<compile_context>
chip_gen: v7x
topology: tpu7x:2x2x1
jax: 0.10.0
libtpu: 0.0.40
codegen_flags: <defaults>
</compile_context>

<pallas_src>
import functools

import jax
import jax.numpy as jnp
from jax.experimental import pallas as pl
from jax.experimental.pallas import tpu as pltpu

LANE = 128
BAG_TILE = 128                    # bags per grid step -> full MXU rows for the FC matmul
N_SLOTS = 4                       # outstanding row DMAs in the HBM-gather path
VMEM_TABLE_LIMIT = 40 * 1024 * 1024   # v7x-safe ceiling for a VMEM-resident table


def _round_up(x, m):
    return ((x + m - 1) // m) * m


# --------------------------------------------------------------------------
# Path A: embedding table resident in VMEM (small / medium vocab).
# --------------------------------------------------------------------------
def _kernel_vmem_table(ids_ref, bags_ref, off_ref,          # scalar prefetch (SMEM)
                       inv_ref, emb_ref, wt_ref, bias_ref,  # inputs (VMEM)
                       out_ref,                             # output (VMEM)
                       acc_ref):                            # scratch (VMEM)
    # ids_ref  : (T,)          int32  flat token ids (clamped)
    # bags_ref : (T,)          int32  bag index of each token
    # off_ref  : (B_pad+1,)    int32  bag start offsets, padded with T
    # inv_ref  : (BAG_TILE,1)  f32    precomputed 1/count for this tile
    # emb_ref  : (V, D_pad)    f32    whole embedding table, VMEM resident
    # wt_ref   : (D_pad,C_pad) f32    fc weight, pre-transposed
    # bias_ref : (1, C_pad)    f32    fc bias
    # out_ref  : (BAG_TILE, C_pad) f32 logits tile
    # acc_ref  : (BAG_TILE, D_pad) f32 per-bag sums
    bag_tile = out_ref.shape[0]
    bag_base = pl.program_id(0) * bag_tile
    t0 = off_ref[bag_base]                  # first token of this bag tile
    t1 = off_ref[bag_base + bag_tile]       # one past the last token

    acc_ref[...] = jnp.zeros_like(acc_ref)

    def body(t, carry):
        tok = ids_ref[t]
        local_bag = bags_ref[t] - bag_base
        row = emb_ref[pl.ds(tok, 1), :]                       # (1, D_pad) VMEM gather
        cur = acc_ref[pl.ds(local_bag, 1), :]
        acc_ref[pl.ds(local_bag, 1), :] = cur + row           # dynamic-row RMW scatter-add
        return carry

    jax.lax.fori_loop(t0, t1, body, 0)

    pooled = acc_ref[...] * inv_ref[...]                      # EmbeddingBag 'mean'
    out_ref[...] = (
        jnp.dot(pooled, wt_ref[...], preferred_element_type=jnp.float32)
        + bias_ref[...]
    )


# --------------------------------------------------------------------------
# Path B: table in HBM, per-token row gather with an N_SLOTS-deep DMA pipeline.
# --------------------------------------------------------------------------
def _kernel_hbm_gather(ids_ref, bags_ref, off_ref,           # scalar prefetch (SMEM)
                       inv_ref, emb_hbm, wt_ref, bias_ref,   # inputs
                       out_ref,                              # output
                       rowbuf, sem, acc_ref):                # scratch
    # emb_hbm : (V, D_pad) f32 embedding table in HBM (pl.ANY)
    # rowbuf  : (N_SLOTS, 1, D_pad) f32 rotating gather buffers
    # sem     : DMA semaphores (N_SLOTS,)
    bag_tile = out_ref.shape[0]
    bag_base = pl.program_id(0) * bag_tile
    t0 = off_ref[bag_base]
    t1 = off_ref[bag_base + bag_tile]
    n = t1 - t0

    acc_ref[...] = jnp.zeros_like(acc_ref)

    def row_copy(t, slot):
        # Descriptor for "row of token t -> rowbuf[slot]"; used for both start & wait
        # so src/dst shapes always match.
        return pltpu.make_async_copy(
            emb_hbm.at[pl.ds(ids_ref[t], 1)], rowbuf.at[slot], sem.at[slot])

    # Prime N_SLOTS-1 outstanding fetches.
    for s in range(N_SLOTS - 1):
        @pl.when(s < n)
        def _(s=s):
            row_copy(t0 + s, s).start()

    def body(i, carry):
        t = t0 + i
        slot = i % N_SLOTS
        local_bag = bags_ref[t] - bag_base        # scalar SMEM reads before the wait
        next_i = i + (N_SLOTS - 1)

        @pl.when(next_i < n)                      # keep N_SLOTS-1 copies in flight
        def _():
            row_copy(t0 + next_i, next_i % N_SLOTS).start()

        row_copy(t, slot).wait()

        row = rowbuf[slot]                        # (1, D_pad)
        cur = acc_ref[pl.ds(local_bag, 1), :]
        acc_ref[pl.ds(local_bag, 1), :] = cur + row
        return carry

    jax.lax.fori_loop(0, n, body, 0)

    pooled = acc_ref[...] * inv_ref[...]
    out_ref[...] = (
        jnp.dot(pooled, wt_ref[...], preferred_element_type=jnp.float32)
        + bias_ref[...]
    )


# --------------------------------------------------------------------------
# Host-side wrappers.
# --------------------------------------------------------------------------
def prepare_params(emb_table, fc_w, fc_b):
    """Pad/cast parameters once at model-load time (not on every forward)."""
    V, D = emb_table.shape
    C = fc_w.shape[0]
    D_pad = _round_up(D, LANE)
    C_pad = _round_up(C, LANE)
    emb_pad = jnp.pad(emb_table.astype(jnp.float32), ((0, 0), (0, D_pad - D)))
    wt_pad = jnp.pad(fc_w.astype(jnp.float32).T, ((0, D_pad - D), (0, C_pad - C)))
    bias_pad = jnp.pad(fc_b.astype(jnp.float32).reshape(1, C), ((0, 0), (0, C_pad - C)))
    return emb_pad, wt_pad, bias_pad


@functools.partial(jax.jit, static_argnames=("num_class", "force_hbm_gather"))
def text_classification_forward(text, offsets, emb_pad, wt_pad, bias_pad,
                                num_class, force_hbm_gather=False):
    """text: (T,) int32; offsets: (B,) int32 (sorted, offsets[0]==0);
    emb_pad/wt_pad/bias_pad from prepare_params().  Returns (B, num_class) f32."""
    T = text.shape[0]
    B = offsets.shape[0]
    V, D_pad = emb_pad.shape
    C_pad = wt_pad.shape[1]

    B_pad = _round_up(B, BAG_TILE)
    num_tiles = B_pad // BAG_TILE

    # ---- scalar / control data (SMEM via scalar prefetch) ----
    ids = jnp.clip(text.astype(jnp.int32), 0, V - 1)       # guard the row gather
    offs = offsets.astype(jnp.int32)
    tok_idx = jnp.arange(T, dtype=jnp.int32)
    bag_ids = jnp.searchsorted(offs, tok_idx, side="right").astype(jnp.int32) - 1
    off_ext = jnp.concatenate(
        [offs, jnp.full((B_pad + 1 - B,), T, dtype=jnp.int32)])            # (B_pad+1,)

    counts = (off_ext[1:B + 1] - off_ext[:B]).astype(jnp.float32)
    inv_counts = 1.0 / jnp.maximum(counts, 1.0)             # empty bags -> zeros (PyTorch)
    inv_pad = jnp.concatenate(
        [inv_counts, jnp.zeros((B_pad - B,), jnp.float32)]).reshape(B_pad, 1)

    # ---- static path choice: VMEM-resident table vs HBM gather ----
    table_bytes = V * D_pad * emb_pad.dtype.itemsize
    use_vmem_table = (not force_hbm_gather) and (table_bytes <= VMEM_TABLE_LIMIT)

    vmem_limit = None
    if use_vmem_table and table_bytes > (8 << 20):
        # Raise the scoped-VMEM limit (16 MiB default on v5e / 32 MiB on v6e) so the
        # resident-table path does not silently fail; cap v7x-safe.
        vmem_limit = int(min(table_bytes + (16 << 20), 48 << 20))

    if use_vmem_table:
        grid_spec = pltpu.PrefetchScalarGridSpec(
            num_scalar_prefetch=3,
            grid=(num_tiles,),
            in_specs=[
                pl.BlockSpec((BAG_TILE, 1), lambda i, ids, bags, off: (i, 0)),   # 1/count
                pl.BlockSpec((V, D_pad), lambda i, ids, bags, off: (0, 0)),      # table (resident)
                pl.BlockSpec((D_pad, C_pad), lambda i, ids, bags, off: (0, 0)),  # fc W^T
                pl.BlockSpec((1, C_pad), lambda i, ids, bags, off: (0, 0)),      # fc bias
            ],
            out_specs=pl.BlockSpec((BAG_TILE, C_pad), lambda i, ids, bags, off: (i, 0)),
            scratch_shapes=[
                pltpu.VMEM((BAG_TILE, D_pad), jnp.float32),   # per-bag sum accumulator
            ],
        )
        kernel = _kernel_vmem_table
    else:
        grid_spec = pltpu.PrefetchScalarGridSpec(
            num_scalar_prefetch=3,
            grid=(num_tiles,),
            in_specs=[
                pl.BlockSpec((BAG_TILE, 1), lambda i, ids, bags, off: (i, 0)),   # 1/count
                pl.BlockSpec(memory_space=pl.ANY),                               # table (HBM)
                pl.BlockSpec((D_pad, C_pad), lambda i, ids, bags, off: (0, 0)),  # fc W^T
                pl.BlockSpec((1, C_pad), lambda i, ids, bags, off: (0, 0)),      # fc bias
            ],
            out_specs=pl.BlockSpec((BAG_TILE, C_pad), lambda i, ids, bags, off: (i, 0)),
            scratch_shapes=[
                pltpu.VMEM((N_SLOTS, 1, D_pad), jnp.float32),   # rotating gather buffers
                pltpu.SemaphoreType.DMA((N_SLOTS,)),
                pltpu.VMEM((BAG_TILE, D_pad), jnp.float32),     # per-bag sum accumulator
            ],
        )
        kernel = _kernel_hbm_gather

    out_pad = pl.pallas_call(
        kernel,
        out_shape=jax.ShapeDtypeStruct((B_pad, C_pad), jnp.float32),
        grid_spec=grid_spec,
        compiler_params=pltpu.CompilerParams(
            dimension_semantics=("parallel",),   # bag tiles split across TCs (v7x) when >1
            vmem_limit_bytes=vmem_limit,
        ),
    )(ids, bag_ids, off_ext, inv_pad, emb_pad, wt_pad, bias_pad)

    return out_pad[:B, :num_class]


if __name__ == "__main__":
    # Small shapes consistent with the module.
    vocab_size = 64
    embed_dim = 32
    num_class = 4
    batch = 4          # number of bags
    total_tokens = 24  # total tokens across all bags

    key = jax.random.PRNGKey(0)
    k_emb, k_fc, k_txt = jax.random.split(key, 3)

    # init_weights(): uniform(-0.5, 0.5) for embedding & fc weight, zero bias.
    initrange = 0.5
    emb_table = jax.random.uniform(k_emb, (vocab_size, embed_dim),
                                   jnp.float32, -initrange, initrange)
    fc_w = jax.random.uniform(k_fc, (num_class, embed_dim),
                              jnp.float32, -initrange, initrange)
    fc_b = jnp.zeros((num_class,), jnp.float32)

    # Flat token ids + per-bag offsets (EmbeddingBag 1-D mode).
    text = jax.random.randint(k_txt, (total_tokens,), 0, vocab_size, jnp.int32)
    offsets = jnp.array([0, 5, 11, 17], jnp.int32)

    # One-time parameter prep (padding / cast hoisted out of the forward path).
    emb_pad, wt_pad, bias_pad = prepare_params(emb_table, fc_w, fc_b)

    # Fast path: VMEM-resident table.
    out_fast = text_classification_forward(
        text, offsets, emb_pad, wt_pad, bias_pad, num_class=num_class)
    out_fast = jax.block_until_ready(out_fast)

    # Large-vocab path: HBM gather with 4-deep DMA pipeline (forced here to validate it).
    out_hbm = text_classification_forward(
        text, offsets, emb_pad, wt_pad, bias_pad, num_class=num_class,
        force_hbm_gather=True)
    out_hbm = jax.block_until_ready(out_hbm)

    # Pure-JAX reference (EmbeddingBag mode='mean' + Linear).
    off_ext = jnp.concatenate([offsets, jnp.array([total_tokens], jnp.int32)])
    tok_emb = emb_table[text]
    pooled = jnp.stack([
        jnp.mean(tok_emb[off_ext[b]:off_ext[b + 1]], axis=0) for b in range(batch)
    ])
    ref = pooled @ fc_w.T + fc_b

    assert out_fast.shape == (batch, num_class)
    assert jnp.allclose(out_fast, ref, atol=1e-4, rtol=1e-4), (out_fast, ref)
    assert jnp.allclose(out_hbm, ref, atol=1e-4, rtol=1e-4), (out_hbm, ref)

    print("KERNEL_OK")
</pallas_src>

<mosaic_0001>
module attributes {stable_mosaic.version = 11 : i64} {
  func.func @_kernel_vmem_table(%arg0: i32, %arg1: memref<24xi32, #tpu.memory_space<smem>>, %arg2: memref<24xi32, #tpu.memory_space<smem>>, %arg3: memref<129xi32, #tpu.memory_space<smem>>, %arg4: memref<128x1xf32, #tpu.memory_space<vmem>>, %arg5: memref<64x128xf32, #tpu.memory_space<vmem>>, %arg6: memref<128x128xf32, #tpu.memory_space<vmem>>, %arg7: memref<1x128xf32, #tpu.memory_space<vmem>>, %arg8: memref<128x128xf32, #tpu.memory_space<vmem>>, %arg9: memref<128x128xf32, #tpu.memory_space<vmem>>) attributes {dimension_semantics = [#tpu.dimension_semantics<parallel>], iteration_bounds = array<i64: 1>, scalar_prefetch = 3 : i64, scratch_operands = 1 : i64, tpu.core_type = #tpu.core_type<tc>, window_params = [{transform_indices = @transform_0, window_bounds = array<i64: 128, 1>}, {pipeline_mode = #tpu.pipeline_mode<synchronous>, transform_indices = @transform_1, window_bounds = array<i64: 64, 128>}, {pipeline_mode = #tpu.pipeline_mode<synchronous>, transform_indices = @transform_2, window_bounds = array<i64: 128, 128>}, {pipeline_mode = #tpu.pipeline_mode<synchronous>, transform_indices = @transform_3, window_bounds = array<i64: 1, 128>}, {transform_indices = @transform_4, window_bounds = array<i64: 128, 128>}]} {
    %c128_i32 = arith.constant 128 : i32
    %0 = arith.muli %arg0, %c128_i32 : i32
    %1 = arith.index_cast %0 : i32 to index
    %2 = memref.load %arg3[%1] : memref<129xi32, #tpu.memory_space<smem>>
    %c128_i32_0 = arith.constant 128 : i32
    %3 = arith.addi %0, %c128_i32_0 : i32
    %4 = arith.index_cast %3 : i32 to index
    %5 = memref.load %arg3[%4] : memref<129xi32, #tpu.memory_space<smem>>
    %cst = arith.constant 0.000000e+00 : f32
    %6 = vector.broadcast %cst : f32 to vector<128x128xf32>
    %c0 = arith.constant 0 : index
    %c0_1 = arith.constant 0 : index
    %7 = vector.load %arg9[%c0, %c0_1] : memref<128x128xf32, #tpu.memory_space<vmem>>, vector<128x128xf32>
    tpu.vector_store %arg9[%c0, %c0_1], %6 {strides = array<i32>} : memref<128x128xf32, #tpu.memory_space<vmem>>, vector<128x128xf32>,
    %c0_i32 = arith.constant 0 : i32
    %8 = arith.subi %5, %2 : i32
    %9 = arith.addi %2, %8 : i32
    %c1_i32 = arith.constant 1 : i32
    scf.for %arg10 = %2 to %9 step %c1_i32  : i32 {
      %20 = arith.index_cast %arg10 : i32 to index
      %21 = memref.load %arg1[%20] : memref<24xi32, #tpu.memory_space<smem>>
      %22 = arith.index_cast %arg10 : i32 to index
      %23 = memref.load %arg2[%22] : memref<24xi32, #tpu.memory_space<smem>>
      %24 = arith.subi %23, %0 : i32
      %25 = arith.index_cast %21 : i32 to index
      %c0_13 = arith.constant 0 : index
      %26 = vector.load %arg5[%25, %c0_13] : memref<64x128xf32, #tpu.memory_space<vmem>>, vector<1x128xf32>
      %27 = arith.index_cast %24 : i32 to index
      %c0_14 = arith.constant 0 : index
      %28 = vector.load %arg9[%27, %c0_14] : memref<128x128xf32, #tpu.memory_space<vmem>>, vector<1x128xf32>
      %29 = arith.addf %28, %26 : vector<1x128xf32>
      %30 = arith.index_cast %24 : i32 to index
      %c0_15 = arith.constant 0 : index
      %31 = vector.load %arg9[%30, %c0_15] : memref<128x128xf32, #tpu.memory_space<vmem>>, vector<1x128xf32>
      tpu.vector_store %arg9[%30, %c0_15], %29 {strides = array<i32>} : memref<128x128xf32, #tpu.memory_space<vmem>>, vector<1x128xf32>,
    }
    %c0_2 = arith.constant 0 : index
    %c0_3 = arith.constant 0 : index
    %10 = vector.load %arg9[%c0_2, %c0_3] : memref<128x128xf32, #tpu.memory_space<vmem>>, vector<128x128xf32>
    %c0_4 = arith.constant 0 : index
    %c0_5 = arith.constant 0 : index
    %11 = vector.load %arg4[%c0_4, %c0_5] : memref<128x1xf32, #tpu.memory_space<vmem>>, vector<128x1xf32>
    %12 = vector.broadcast %11 : vector<128x1xf32> to vector<128x128xf32>
    %13 = arith.mulf %10, %12 : vector<128x128xf32>
    %c0_6 = arith.constant 0 : index
    %c0_7 = arith.constant 0 : index
    %14 = vector.load %arg6[%c0_6, %c0_7] : memref<128x128xf32, #tpu.memory_space<vmem>>, vector<128x128xf32>
    %cst_8 = arith.constant dense<0.000000e+00> : vector<128x128xf32>
    %15 = tpu.matmul %13, %14, %cst_8 {dimension_numbers = #tpu.dot_dimension_numbers<[1], [0], [0], [1], [0, 0, 1, 1], [], []>} : vector<128x128xf32>, vector<128x128xf32>, vector<128x128xf32> -> vector<128x128xf32>
    %c0_9 = arith.constant 0 : index
    %c0_10 = arith.constant 0 : index
    %16 = vector.load %arg7[%c0_9, %c0_10] : memref<1x128xf32, #tpu.memory_space<vmem>>, vector<1x128xf32>
    %17 = vector.broadcast %16 : vector<1x128xf32> to vector<128x128xf32>
    %18 = arith.addf %15, %17 : vector<128x128xf32>
    %c0_11 = arith.constant 0 : index
    %c0_12 = arith.constant 0 : index
    %19 = vector.load %arg8[%c0_11, %c0_12] : memref<128x128xf32, #tpu.memory_space<vmem>>, vector<128x128xf32>
    tpu.vector_store %arg8[%c0_11, %c0_12], %18 {strides = array<i32>} : memref<128x128xf32, #tpu.memory_space<vmem>>, vector<128x128xf32>,
    return
  }
  func.func @transform_0(%arg0: i32, %arg1: memref<24xi32, #tpu.memory_space<smem>>, %arg2: memref<24xi32, #tpu.memory_space<smem>>, %arg3: memref<129xi32, #tpu.memory_space<smem>>) -> (i32, i32) {
    %c0_i32 = arith.constant 0 : i32
    %c0_i32_0 = arith.constant 0 : i32
    return %arg0, %c0_i32 : i32, i32
  }
  func.func @transform_1(%arg0: i32, %arg1: memref<24xi32, #tpu.memory_space<smem>>, %arg2: memref<24xi32, #tpu.memory_space<smem>>, %arg3: memref<129xi32, #tpu.memory_space<smem>>) -> (i32, i32) {
    %c0_i32 = arith.constant 0 : i32
    %c0_i32_0 = arith.constant 0 : i32
    %c0_i32_1 = arith.constant 0 : i32
    return %c0_i32, %c0_i32_0 : i32, i32
  }
  func.func @transform_2(%arg0: i32, %arg1: memref<24xi32, #tpu.memory_space<smem>>, %arg2: memref<24xi32, #tpu.memory_space<smem>>, %arg3: memref<129xi32, #tpu.memory_space<smem>>) -> (i32, i32) {
    %c0_i32 = arith.constant 0 : i32
    %c0_i32_0 = arith.constant 0 : i32
    %c0_i32_1 = arith.constant 0 : i32
    return %c0_i32, %c0_i32_0 : i32, i32
  }
  func.func @transform_3(%arg0: i32, %arg1: memref<24xi32, #tpu.memory_space<smem>>, %arg2: memref<24xi32, #tpu.memory_space<smem>>, %arg3: memref<129xi32, #tpu.memory_space<smem>>) -> (i32, i32) {
    %c0_i32 = arith.constant 0 : i32
    %c0_i32_0 = arith.constant 0 : i32
    %c0_i32_1 = arith.constant 0 : i32
    return %c0_i32, %c0_i32_0 : i32, i32
  }
  func.func @transform_4(%arg0: i32, %arg1: memref<24xi32, #tpu.memory_space<smem>>, %arg2: memref<24xi32, #tpu.memory_space<smem>>, %arg3: memref<129xi32, #tpu.memory_space<smem>>) -> (i32, i32) {
    %c0_i32 = arith.constant 0 : i32
    %c0_i32_0 = arith.constant 0 : i32
    return %arg0, %c0_i32 : i32, i32
  }
}

</mosaic_0001>

<bundles_post_ra>
// kernel: custom-call.1
= control target key start
LH: loop header
LB: loop body
LE: loop exit
PB: predicated region body
PF: predicated region fallthrough
CT: control target
= control target key end

     0   :  { %s6_s0 = inlined_call_operand.vmem [shape: u32[24], index: 0, kind: output, shape index: {}]  }

// kernel: text_classification_forward.1
= control target key start
LH: loop header
LB: loop body
LE: loop exit
PB: predicated region body
PF: predicated region fallthrough
CT: control target
= control target key end

     0   :  { %s799_s0 = inlined_call_operand.vmem [shape: s32[24], index: 0, kind: input, shape index: {}]   ;;  %s800_s3 = inlined_call_operand.vmem [shape: f32[128,1], index: 3, kind: input, shape index: {}]   ;;  %s801_s4 = inlined_call_operand.vmem [shape: f32[64,128], index: 4, kind: input, shape index: {}]   ;;  %s802_s5 = inlined_call_operand.vmem [shape: f32[128,128], index: 5, kind: input, shape index: {}]   ;;  %s803_s6 = inlined_call_operand.vmem [shape: f32[1,128], index: 6, kind: input, shape index: {}]   ;;  %s804_s7 = inlined_call_operand.vmem [shape: f32[128,128], index: 7, kind: output, shape index: {}]   ;;  %s805_s1 = inlined_call_operand.vmem [shape: s32[24], index: 1, kind: input, shape index: {}]   ;;  %s806_s2 = inlined_call_operand.vmem [shape: s32[129], index: 2, kind: input, shape index: {}]  }
   0x1   :  { %s12_s26 = sshll.u32 %s799_s0, 4  ;;  %s16_s29 = sshll.u32 %s805_s1, 4  ;;  %s13_s26 = int_to_ptr.vmem [resolvable:$true] %s12_s26  ;;  %s17_s29 = int_to_ptr.vmem [resolvable:$true] %s16_s29 }
   0x2   :  { %s545_s30 = scalar_lea.vmem %s13_s26, 16  ;;  %p550_p1 = scmp.lt.s32.totalorder %s13_s26, %s13_s26 }
   0x3   :  { %p546_p0 = scmp.ne.s32.totalorder %s13_s26, %s545_s30  ;;  %p551_p2 = scmp.lt.s32.totalorder %s545_s30, %s545_s30 }
   0x5   :  { %p552_p3 = por %p551_p2, %p550_p1 }
   0x7   :  { %p553_p4 = pnand %p552_p3, %p546_p0 }
   0x9   :  { %556 = shalt.err (!%p553_p4)  }
   0xa   :  { %s591_s8 = smov [#allocation4]   ;;  %s557_s9 = scalar_lea.vmem %s17_s29, 16 }
   0xb   :  { %15 = dma.vmem_to_smem %s13_s26, 16, %s591_s8, [#allocation3] }
   0xc   :  { %p558_p5 = scmp.ne.s32.totalorder %s17_s29, %s557_s9  ;;  %p562_p6 = scmp.lt.s32.totalorder %s17_s29, %s17_s29 }
   0xd   :  { %p563_p7 = scmp.lt.s32.totalorder %s557_s9, %s557_s9 }
   0xf   :  { %p564_p8 = por %p563_p7, %p562_p6 }
  0x11   :  { %p565_p9 = pnand %p564_p8, %p558_p5 }
  0x13   :  { %568 = shalt.err (!%p565_p9)  }
  0x14   :  { %s592_s0 = smov [#allocation5]   ;;  %s20_s11 = sshll.u32 %s806_s2, 4  ;;  %s21_s11 = int_to_ptr.vmem [resolvable:$true] %s20_s11 }
  0x15   :  { %19 = dma.vmem_to_smem %s17_s29, 16, %s592_s0, [#allocation3] }
  0x16   :  { %s569_s12 = scalar_lea.vmem %s21_s11, 32  ;;  %p574_p11 = scmp.lt.s32.totalorder %s21_s11, %s21_s11 }
  0x17   :  { %p570_p10 = scmp.ne.s32.totalorder %s21_s11, %s569_s12  ;;  %p575_p12 = scmp.lt.s32.totalorder %s569_s12, %s569_s12 }
  0x19   :  { %p576_p13 = por %p575_p12, %p574_p11 }
  0x1b   :  { %p577_p0 = pnand %p576_p13, %p570_p10 }
  0x1d   :  { %580 = shalt.err (!%p577_p0)  }
  0x1e   :  { %s593_s13 = smov [#allocation6]  }
  0x1f   :  { %23 = dma.vmem_to_smem %s21_s11, 32, %s593_s13, [#allocation3] }
  0x20   :  { %585 = dma.done.wait [#allocation3], 64 }
  0x21   :  { %586 = vsyncadd [#allocation3], 4294967232 }
  0x22   :  { %25 = sfence }
  0x23   :  { %s35_s14 = sld [smem:[#allocation6]]   ;;  %v594_v0 = vmov 0.0  }
  0x24   :  { %s645_s15 = sld [smem:[#allocation6 + $0x80]]  ;;  %38 = vst [vmem:[#allocation2] sm:$0xff] %v594_v0  ;;  %39 = vst [vmem:[#allocation2 + $0x8] sm:$0xff] %v594_v0 }
  0x25   :  { %40 = vst [vmem:[#allocation2 + $0x10] sm:$0xff] %v594_v0  ;;  %41 = vst [vmem:[#allocation2 + $0x18] sm:$0xff] %v594_v0 }
  0x26   :  { %42 = vst [vmem:[#allocation2 + $0x20] sm:$0xff] %v594_v0  ;;  %43 = vst [vmem:[#allocation2 + $0x28] sm:$0xff] %v594_v0 }
  0x27   :  { %44 = vst [vmem:[#allocation2 + $0x30] sm:$0xff] %v594_v0  ;;  %45 = vst [vmem:[#allocation2 + $0x38] sm:$0xff] %v594_v0 }
  0x28   :  { %46 = vst [vmem:[#allocation2 + $0x40] sm:$0xff] %v594_v0  ;;  %47 = vst [vmem:[#allocation2 + $0x48] sm:$0xff] %v594_v0 }
  0x29   :  { %48 = vst [vmem:[#allocation2 + $0x50] sm:$0xff] %v594_v0  ;;  %49 = vst [vmem:[#allocation2 + $0x58] sm:$0xff] %v594_v0 }
  0x2a   :  { %50 = vst [vmem:[#allocation2 + $0x60] sm:$0xff] %v594_v0  ;;  %51 = vst [vmem:[#allocation2 + $0x68] sm:$0xff] %v594_v0  ;;  %p388_p1 = scmp.ge.s32.totalorder %s35_s14, %s645_s15 }
  0x2b   :  { %52 = vst [vmem:[#allocation2 + $0x70] sm:$0xff] %v594_v0  ;;  %53 = vst [vmem:[#allocation2 + $0x78] sm:$0xff] %v594_v0  ;;  %s587_s2 = smov (!%p388_p1), %s35_s14  }
  0x2c   :  { %389 = sbr.rel (%p388_p1) target bundleno = 63 (0x3f), region = 39 }
  0x33 LB: > { %s60_s16 = sld [smem:[#allocation4 + %s589_s2]]  ;;  %s589_s2 = sphi %s587_s2, %s57_s2  }
  0x34   : > { %s61_s17 = sld [smem:[#allocation5 + %s589_s2]]  ;;  %s57_s2 = sadd.s32 1, %s589_s2  }
  0x35   : > { %p56_p2 = scmp.ge.s32.totalorder %s57_s2, %s645_s15 }
  0x38   :  { %59 = sbr.rel (!%p56_p2) target bundleno = 51 (0x33), region = 45 }
  0x39   : > { %s63_s20 = scalar_lea.vmem %s801_s4, %s60_s16 }
  0x3a   : > { %v64_v1 = vld [vmem:[%s63_s20] sm:$0x1]  ;;  %s65_s21 = scalar_lea.vmem [#allocation2], %s61_s17 }
  0x3b   : > { %v66_v2 = vld [vmem:[%s65_s21] sm:$0x1] }
  0x3c   : > { %v67_v3 = vadd.f32 %v66_v2, %v64_v1 }
  0x3e   : > { %68 = vst [vmem:[%s65_s21] sm:$0x1] %v67_v3 }
  0x3f PF:  { %v86_v4 = vld [vmem:[%s800_s3 + $0x8] sm:$0xff]  ;;  %v85_v5 = vld [vmem:[%s800_s3] sm:$0xff]  ;;  %v595_v6 = vmov 0   ;;  %v199_v12 = vld [vmem:[%s802_s5 + $0x10] sm:$0xff] }
  0x40   :  { %544 = vset.pattern.permute.xlu1 %v595_v6  ;;  %543 = vset.pattern.permute.xlu0 %v595_v6  ;;  %v94_v7 = vld [vmem:[%s800_s3 + $0x48] sm:$0xff]  ;;  %v93_v8 = vld [vmem:[%s800_s3 + $0x40] sm:$0xff]  ;;  %v200_v13 = vld [vmem:[%s802_s5 + $0x18] sm:$0xff] }
  0x41   :  { %108 = vperm.xlu1 %544, %v86_v4   ;;  %103 = vperm.xlu0 %543, %v85_v5   ;;  %v197_v9 = vld [vmem:[%s802_s5] sm:$0xff]  ;;  %v198_v10 = vld [vmem:[%s802_s5 + $0x8] sm:$0xff]  ;;  %v95_v14 = vld [vmem:[%s800_s3 + $0x50] sm:$0xff]  ;;  %v486_v16 = vpack.c.bf16 %v200_v13, %v199_v12 }
  0x42   :  { %v482_v11 = vpack.c.bf16 %v198_v10, %v197_v9  ;;  %v87_v15 = vld [vmem:[%s800_s3 + $0x10] sm:$0xff]  ;;  %v201_v17 = vld [vmem:[%s802_s5 + $0x20] sm:$0xff]  ;;  %v202_v18 = vld [vmem:[%s802_s5 + $0x28] sm:$0xff] }
  0x43   :  { %v96_v19 = vld [vmem:[%s800_s3 + $0x58] sm:$0xff]  ;;  %v490_v21 = vpack.c.bf16 %v202_v18, %v201_v17  ;;  %v203_v22 = vld [vmem:[%s802_s5 + $0x30] sm:$0xff]  ;;  %v97_v24 = vld [vmem:[%s800_s3 + $0x60] sm:$0xff] }
  0x44   :  { %483 = vmatprep.subr.bf16.mxu0 %v482_v11  ;;  %514 = vmatprep.subr.bf16.mxu1 %v482_v11  ;;  %v88_v20 = vld [vmem:[%s800_s3 + $0x18] sm:$0xff]  ;;  %v89_v25 = vld [vmem:[%s800_s3 + $0x20] sm:$0xff]  ;;  %v206_v28 = vld [vmem:[%s802_s5 + $0x48] sm:$0xff] }
  0x45   :  { %148 = vperm.xlu1 %544, %v94_v7   ;;  %143 = vperm.xlu0 %543, %v93_v8   ;;  %v204_v23 = vld [vmem:[%s802_s5 + $0x38] sm:$0xff]  ;;  %v205_v27 = vld [vmem:[%s802_s5 + $0x40] sm:$0xff]  ;;  %v98_v29 = vld [vmem:[%s800_s3 + $0x68] sm:$0xff] }
  0x46   :  { %485 = vmatpush3.bf16.msra.mxu0 %v482_v11  ;;  %522 = vmatpush3.bf16.msra.mxu1 %v482_v11  ;;  %v494_v26 = vpack.c.bf16 %v204_v23, %v203_v22  ;;  %v90_v30 = vld [vmem:[%s800_s3 + $0x28] sm:$0xff]  ;;  %v498_v31 = vpack.c.bf16 %v206_v28, %v205_v27  ;;  %v207_v32 = vld [vmem:[%s802_s5 + $0x50] sm:$0xff]  ;;  %v208_v33 = vld [vmem:[%s802_s5 + $0x58] sm:$0xff] }
  0x47   :  { %487 = vmatprep.subr.bf16.mxu0 %v486_v16  ;;  %515 = vmatprep.subr.bf16.mxu1 %v486_v16  ;;  %v99_v34 = vld [vmem:[%s800_s3 + $0x70] sm:$0xff]  ;;  %v502_v36 = vpack.c.bf16 %v208_v33, %v207_v32  ;;  %v209_v37 = vld [vmem:[%s802_s5 + $0x60] sm:$0xff]  ;;  %v210_v38 = vld [vmem:[%s802_s5 + $0x68] sm:$0xff] }
  0x48   :  { %v91_v35 = vld [vmem:[%s800_s3 + $0x30] sm:$0xff]  ;;  %v100_v39 = vld [vmem:[%s800_s3 + $0x78] sm:$0xff]  ;;  %v506_v41 = vpack.c.bf16 %v210_v38, %v209_v37  ;;  %v70_v45 = vld [vmem:[#allocation2 + $0x8] sm:$0xff] }
  0x49   :  { %153 = vperm.xlu1 %544, %v95_v14   ;;  %113 = vperm.xlu0 %543, %v87_v15   ;;  %v92_v40 = vld [vmem:[%s800_s3 + $0x38] sm:$0xff]  ;;  %v211_v42 = vld [vmem:[%s802_s5 + $0x70] sm:$0xff]  ;;  %v69_v46 = vld [vmem:[#allocation2] sm:$0xff] }
  0x4a   :  { %489 = vmatpush3.bf16.msra.mxu0 %v486_v16  ;;  %523 = vmatpush3.bf16.msra.mxu1 %v486_v16  ;;  %v212_v43 = vld [vmem:[%s802_s5 + $0x78] sm:$0xff]  ;;  %v78_v51 = vld [vmem:[#allocation2 + $0x48] sm:$0xff]  ;;  %v77_v52 = vld [vmem:[#allocation2 + $0x40] sm:$0xff] }
  0x4b   :  { %491 = vmatprep.subr.bf16.mxu0 %v490_v21  ;;  %516 = vmatprep.subr.bf16.mxu1 %v490_v21  ;;  %v510_v44 = vpack.c.bf16 %v212_v43, %v211_v42  ;;  %v79_v57 = vld [vmem:[#allocation2 + $0x50] sm:$0xff]  ;;  %v80_v63 = vld [vmem:[#allocation2 + $0x58] sm:$0xff]  ;;  %v81_v5 = vld [vmem:[#allocation2 + $0x60] sm:$0xff] }
  0x4c   :  { %v71_v58 = vld [vmem:[#allocation2 + $0x10] sm:$0xff]  ;;  %v72_v0 = vld [vmem:[#allocation2 + $0x18] sm:$0xff]  ;;  %v73_v6 = vld [vmem:[#allocation2 + $0x20] sm:$0xff] }
  0x4d   :  { %158 = vperm.xlu1 %544, %v96_v19   ;;  %118 = vperm.xlu0 %543, %v88_v20   ;;  %v82_v11 = vld [vmem:[#allocation2 + $0x68] sm:$0xff]  ;;  %v83_v17 = vld [vmem:[#allocation2 + $0x70] sm:$0xff]  ;;  %v84_v23 = vld [vmem:[#allocation2 + $0x78] sm:$0xff] }
  0x4e   :  { %493 = vmatpush3.bf16.msra.mxu0 %v490_v21  ;;  %524 = vmatpush3.bf16.msra.mxu1 %v490_v21  ;;  %v74_v12 = vld [vmem:[#allocation2 + $0x28] sm:$0xff]  ;;  %v75_v18 = vld [vmem:[#allocation2 + $0x30] sm:$0xff] }
  0x4f   :  { %495 = vmatprep.subr.bf16.mxu0 %v494_v26  ;;  %517 = vmatprep.subr.bf16.mxu1 %v494_v26 }
  0x51   :  { %163 = vperm.xlu1 %544, %v97_v24   ;;  %123 = vperm.xlu0 %543, %v89_v25   ;;  %v76_v24 = vld [vmem:[#allocation2 + $0x38] sm:$0xff] }
  0x52   :  { %497 = vmatpush3.bf16.msra.mxu0 %v494_v26  ;;  %525 = vmatpush3.bf16.msra.mxu1 %v494_v26 }
  0x53   :  { %499 = vmatprep.subr.bf16.mxu0 %v498_v31  ;;  %518 = vmatprep.subr.bf16.mxu1 %v498_v31 }
  0x55   :  { %168 = vperm.xlu1 %544, %v98_v29   ;;  %128 = vperm.xlu0 %543, %v90_v30   ;;  %v393_v29 = vld [vmem:[%s803_s6] ss:$0 sm:$0xff] }
  0x56   :  { %501 = vmatpush3.bf16.msra.mxu0 %v498_v31  ;;  %526 = vmatpush3.bf16.msra.mxu1 %v498_v31 }
  0x57   :  { %503 = vmatprep.subr.bf16.mxu0 %v502_v36  ;;  %519 = vmatprep.subr.bf16.mxu1 %v502_v36 }
  0x59   :  { %173 = vperm.xlu1 %544, %v99_v34   ;;  %133 = vperm.xlu0 %543, %v91_v35  }
  0x5a   :  { %505 = vmatpush3.bf16.msra.mxu0 %v502_v36  ;;  %527 = vmatpush3.bf16.msra.mxu1 %v502_v36 }
  0x5b   :  { %507 = vmatprep.subr.bf16.mxu0 %v506_v41  ;;  %520 = vmatprep.subr.bf16.mxu1 %v506_v41 }
  0x5d   :  { %178 = vperm.xlu1 %544, %v100_v39   ;;  %138 = vperm.xlu0 %543, %v92_v40  }
  0x5e   :  { %509 = vmatpush3.bf16.msra.mxu0 %v506_v41  ;;  %528 = vmatpush3.bf16.msra.mxu1 %v506_v41 }
  0x5f   :  { %511 = vmatprep.subr.bf16.mxu0 %v510_v44  ;;  %521 = vmatprep.subr.bf16.mxu1 %v510_v44 }
  0x62   :  { %513 = vmatpush3.bf16.msra.mxu0 %v510_v44  ;;  %529 = vmatpush3.bf16.msra.mxu1 %v510_v44 }
  0xc0   :  { %v109_v47 = vpop.permute.xlu1 %108  ;;  %v104_v48 = vpop.permute.xlu0 %103 }
  0xc1   :  { %v182_v49 = vmul.f32 %v109_v47, %v70_v45  ;;  %v181_v50 = vmul.f32 %v104_v48, %v69_v46 }
  0xc3   :  { %458 = vmatprep.mubr.f32.mxu0 %v181_v50 }
  0xc4   :  { %v149_v53 = vpop.permute.xlu1 %148  ;;  %v144_v54 = vpop.permute.xlu0 %143  ;;  %459 = vmatmul.mubr.f32.vlgmr.msra.gmra.mrb[0].mxu0 %v182_v49 }
  0xc5   :  { %v190_v55 = vmul.f32 %v149_v53, %v78_v51  ;;  %v189_v56 = vmul.f32 %v144_v54, %v77_v52 }
  0xc7   :  { %470 = vmatprep.mubr.f32.mxu1 %v189_v56 }
  0xc8   :  { %v154_v59 = vpop.permute.xlu1 %153  ;;  %v114_v60 = vpop.permute.xlu0 %113  ;;  %471 = vmatmul.mubr.f32.vlgmr.msra.gmra.mrb[0].mxu1 %v190_v55 }
  0xc9   :  { %v191_v61 = vmul.f32 %v154_v59, %v79_v57  ;;  %v183_v62 = vmul.f32 %v114_v60, %v71_v58 }
  0xcb   :  { %461 = vmatprep.mubr.f32.mxu0 %v183_v62  ;;  %473 = vmatprep.mubr.f32.mxu1 %v191_v61 }
  0xcc   :  { %v159_v1 = vpop.permute.xlu1 %158  ;;  %v119_v2 = vpop.permute.xlu0 %118 }
  0xcd   :  { %v192_v3 = vmul.f32 %v159_v1, %v80_v63  ;;  %v184_v4 = vmul.f32 %v119_v2, %v72_v0 }
  0xcf   :  { %462 = vmatmul.mubr.f32.gmra.mrb[2].mxu0 %v184_v4  ;;  %474 = vmatmul.mubr.f32.gmra.mrb[2].mxu1 %v192_v3 }
  0xd0   :  { %v164_v7 = vpop.permute.xlu1 %163  ;;  %v124_v8 = vpop.permute.xlu0 %123 }
  0xd1   :  { %v193_v9 = vmul.f32 %v164_v7, %v81_v5  ;;  %v185_v10 = vmul.f32 %v124_v8, %v73_v6 }
  0xd3   :  { %464 = vmatprep.mubr.f32.mxu0 %v185_v10  ;;  %476 = vmatprep.mubr.f32.mxu1 %v193_v9 }
  0xd4   :  { %v169_v13 = vpop.permute.xlu1 %168  ;;  %v129_v14 = vpop.permute.xlu0 %128 }
  0xd5   :  { %v194_v15 = vmul.f32 %v169_v13, %v82_v11  ;;  %v186_v16 = vmul.f32 %v129_v14, %v74_v12 }
  0xd7   :  { %465 = vmatmul.mubr.f32.gmra.mrb[4].mxu0 %v186_v16  ;;  %477 = vmatmul.mubr.f32.gmra.mrb[4].mxu1 %v194_v15 }
  0xd8   :  { %v174_v19 = vpop.permute.xlu1 %173  ;;  %v134_v20 = vpop.permute.xlu0 %133 }
  0xd9   :  { %v195_v21 = vmul.f32 %v174_v19, %v83_v17  ;;  %v187_v22 = vmul.f32 %v134_v20, %v75_v18 }
  0xdb   :  { %467 = vmatprep.mubr.f32.mxu0 %v187_v22  ;;  %479 = vmatprep.mubr.f32.mxu1 %v195_v21 }
  0xdc   :  { %v179_v25 = vpop.permute.xlu1 %178  ;;  %v139_v26 = vpop.permute.xlu0 %138 }
  0xdd   :  { %v196_v27 = vmul.f32 %v179_v25, %v84_v23  ;;  %v188_v28 = vmul.f32 %v139_v26, %v76_v24 }
  0xdf   :  { %468 = vmatmul.mubr.f32.gmra.mrb[6].mxu0 %v188_v28  ;;  %480 = vmatmul.mubr.f32.gmra.mrb[6].mxu1 %v196_v27 }
 0x197   :  { %v460_v30 = vpop.f32.mrb[0].mxu0 }
 0x198   :  { %v292_v31 = vadd.f32 %v460_v30, %v393_v29  ;;  %v286_v32 = vpop.f32.mrb[1].mxu0 }
 0x199   :  { %v287_v33 = vadd.f32 %v393_v29, %v286_v32 }
 0x19a   :  { %366 = vst [vmem:[%s804_s7 + $0x8] sm:$0xff] %v292_v31 }
 0x19b   :  { %365 = vst [vmem:[%s804_s7] sm:$0xff] %v287_v33  ;;  %v472_v34 = vpop.f32.mrb[0].mxu1 }
 0x19c   :  { %v332_v35 = vadd.f32 %v472_v34, %v393_v29  ;;  %v326_v36 = vpop.f32.mrb[1].mxu1 }
 0x19d   :  { %v327_v37 = vadd.f32 %v393_v29, %v326_v36 }
 0x19e   :  { %374 = vst [vmem:[%s804_s7 + $0x48] sm:$0xff] %v332_v35 }
 0x19f   :  { %373 = vst [vmem:[%s804_s7 + $0x40] sm:$0xff] %v327_v37 }
 0x1a2   :  { %v463_v38 = vpop.f32.mrb[2].mxu0  ;;  %v475_v39 = vpop.f32.mrb[2].mxu1 }
 0x1a3   :  { %v302_v40 = vadd.f32 %v463_v38, %v393_v29  ;;  %v342_v41 = vadd.f32 %v475_v39, %v393_v29  ;;  %v296_v42 = vpop.f32.mrb[3].mxu0  ;;  %v336_v43 = vpop.f32.mrb[3].mxu1 }
 0x1a4   :  { %v297_v44 = vadd.f32 %v393_v29, %v296_v42  ;;  %v337_v45 = vadd.f32 %v393_v29, %v336_v43 }
 0x1a5   :  { %368 = vst [vmem:[%s804_s7 + $0x18] sm:$0xff] %v302_v40  ;;  %376 = vst [vmem:[%s804_s7 + $0x58] sm:$0xff] %v342_v41 }
 0x1a6   :  { %367 = vst [vmem:[%s804_s7 + $0x10] sm:$0xff] %v297_v44  ;;  %375 = vst [vmem:[%s804_s7 + $0x50] sm:$0xff] %v337_v45 }
 0x1aa   :  { %v466_v46 = vpop.f32.mrb[4].mxu0  ;;  %v478_v47 = vpop.f32.mrb[4].mxu1 }
 0x1ab   :  { %v312_v48 = vadd.f32 %v466_v46, %v393_v29  ;;  %v352_v49 = vadd.f32 %v478_v47, %v393_v29  ;;  %v306_v50 = vpop.f32.mrb[5].mxu0  ;;  %v346_v51 = vpop.f32.mrb[5].mxu1 }
 0x1ac   :  { %v307_v52 = vadd.f32 %v393_v29, %v306_v50  ;;  %v347_v53 = vadd.f32 %v393_v29, %v346_v51 }
 0x1ad   :  { %370 = vst [vmem:[%s804_s7 + $0x28] sm:$0xff] %v312_v48  ;;  %378 = vst [vmem:[%s804_s7 + $0x68] sm:$0xff] %v352_v49 }
 0x1ae   :  { %369 = vst [vmem:[%s804_s7 + $0x20] sm:$0xff] %v307_v52  ;;  %377 = vst [vmem:[%s804_s7 + $0x60] sm:$0xff] %v347_v53 }
 0x1b2   :  { %v469_v54 = vpop.f32.mrb[6].mxu0  ;;  %v481_v55 = vpop.f32.mrb[6].mxu1 }
 0x1b3   :  { %v322_v56 = vadd.f32 %v469_v54, %v393_v29  ;;  %v362_v57 = vadd.f32 %v481_v55, %v393_v29  ;;  %v316_v58 = vpop.f32.mrb[7].mxu0  ;;  %v356_v59 = vpop.f32.mrb[7].mxu1 }
 0x1b4   :  { %v317_v60 = vadd.f32 %v393_v29, %v316_v58  ;;  %v357_v61 = vadd.f32 %v393_v29, %v356_v59 }
 0x1b5   :  { %372 = vst [vmem:[%s804_s7 + $0x38] sm:$0xff] %v322_v56  ;;  %380 = vst [vmem:[%s804_s7 + $0x78] sm:$0xff] %v362_v57 }
 0x1b6   :  { %371 = vst [vmem:[%s804_s7 + $0x30] sm:$0xff] %v317_v60  ;;  %379 = vst [vmem:[%s804_s7 + $0x70] sm:$0xff] %v357_v61 }

</bundles_post_ra>
